<compile_context>
chip_gen: v7x
topology: tpu7x:2x2x1
jax: 0.10.0
libtpu: 0.0.40
codegen_flags: <defaults>
</compile_context>

<pallas_src>
import functools

import jax
import jax.numpy as jnp
from jax import lax
from jax.experimental import pallas as pl
from jax.experimental.pallas import tpu as pltpu

# Synthetic config (cfg.IMGF.*) — small, deterministic shapes.
EMBEDDING_DIM = 32    # cfg.IMGF.embedding_dim
HID_DIM = 128         # cfg.IMGF.hid_dim (lane-dense hidden)
INPUT_DIM = 64        # cfg.IMGF.input_dim


def _round_up(x, m):
    return ((x + m - 1) // m) * m


def _mlp_kernel(x_ref, w1_ref, b1_ref, w2_ref, b2_ref, o_ref):
    # x_ref:  (TM, E)  bf16
    # w1_ref: (H, E)   bf16    b1_ref: (1, H) f32   (PyTorch nn.Linear layout)
    # w2_ref: (O, H)   bf16    b2_ref: (1, O) f32
    # o_ref:  (TM, O)  f32
    # L1: contract E (x dim 1 with w1 dim 1) -> (TM, H); bf16 operands, f32 acc.
    h = lax.dot_general(
        x_ref[...], w1_ref[...],
        dimension_numbers=(((1,), (1,)), ((), ())),
        preferred_element_type=jnp.float32,
    )
    h = jnp.maximum(h + b1_ref[...], 0.0)          # bias + ReLU in f32 (VPU)
    # L2: contract H (h dim 1 with w2 dim 1) -> (TM, O); cast h to bf16 only
    # at the MXU input, accumulate in f32.
    y = lax.dot_general(
        h.astype(w2_ref.dtype), w2_ref[...],
        dimension_numbers=(((1,), (1,)), ((), ())),
        preferred_element_type=jnp.float32,
    )
    o_ref[...] = (y + b2_ref[...]).astype(o_ref.dtype)


def _mlp_reference_f32(x2, w1, b1, w2, b2):
    # Plain-XLA path (fuses into the surrounding graph); used for tiny batches.
    h = jnp.maximum(x2 @ w1.T + b1, 0.0)
    return h @ w2.T + b2


def linear_decoder_2_forward(x, w1, b1, w2, b2, *,
                             tm_max=2048, fast_path_n=256,
                             matmul_dtype=jnp.bfloat16, out_dtype=None):
    """y = relu(x @ w1.T + b1) @ w2.T + b2, matching LINEAR_DECODER_2.forward.

    x:  (..., E)        float32  (if 3-D with middle dim 1 it is squeezed,
                                  mirroring `input.squeeze(1)` in the module)
    w1: (H, E)  b1: (H,)         PyTorch nn.Linear layouts (no transpose needed)
    w2: (O, H)  b2: (O,)
    returns (..., O) in `out_dtype` (defaults to x.dtype)
    """
    if x.ndim == 3 and x.shape[1] == 1:
        x = jnp.squeeze(x, axis=1)                 # glue: torch .squeeze(1)

    lead = x.shape[:-1]
    E = x.shape[-1]
    H = w1.shape[0]
    O = w2.shape[0]
    out_dtype = x.dtype if out_dtype is None else out_dtype

    x2 = x.reshape(-1, E)                          # glue: flatten leading dims
    N = x2.shape[0]

    # Empty batch: nothing to do (avoid a zero-length grid).
    if N == 0:
        return jnp.zeros(lead + (O,), dtype=out_dtype)

    # Tiny batches: pallas_call launch overhead dominates sub-microsecond math;
    # let XLA fuse the whole thing instead.
    if N <= fast_path_n:
        y = _mlp_reference_f32(x2, w1, b1, w2, b2).astype(out_dtype)
        return y.reshape(lead + (O,))

    # Explicit matmul precision: bf16 operands (single MXU pass), f32 accum.
    x2_mm = x2.astype(matmul_dtype)
    w1_mm = w1.astype(matmul_dtype)
    w2_mm = w2.astype(matmul_dtype)
    b1_2 = b1.reshape(1, H).astype(jnp.float32)
    b2_2 = b2.reshape(1, O).astype(jnp.float32)

    # Row tile: multiple of 16 (bf16 sublane packing), capped at tm_max.
    # When the whole batch fits in <= 2 max-size tiles, split it into ~2
    # balanced tiles so v7x's second TensorCore gets work (dimension_semantics
    # "parallel" shards grid steps across cores).
    tm_max = _round_up(tm_max, 16)
    if N <= 2 * tm_max:
        TM = min(tm_max, _round_up(pl.cdiv(N, 2), 16))
    else:
        TM = tm_max
    grid = (pl.cdiv(N, TM),)

    out = pl.pallas_call(
        _mlp_kernel,
        out_shape=jax.ShapeDtypeStruct((N, O), out_dtype),
        grid=grid,
        in_specs=[
            pl.BlockSpec((TM, E), lambda i: (i, 0)),   # x: tiled over rows
            pl.BlockSpec((H, E), lambda i: (0, 0)),    # w1: VMEM-resident
            pl.BlockSpec((1, H), lambda i: (0, 0)),    # b1: VMEM-resident
            pl.BlockSpec((O, H), lambda i: (0, 0)),    # w2: VMEM-resident
            pl.BlockSpec((1, O), lambda i: (0, 0)),    # b2: VMEM-resident
        ],
        out_specs=pl.BlockSpec((TM, O), lambda i: (i, 0)),
        compiler_params=pltpu.CompilerParams(
            dimension_semantics=("parallel",),         # shard rows across TCs
        ),
    )(x2_mm, w1_mm, b1_2, w2_mm, b2_2)

    return out.reshape(lead + (O,))


if __name__ == "__main__":
    key = jax.random.PRNGKey(0)
    kx, kxb, kw1, kb1, kw2, kb2 = jax.random.split(key, 6)

    # Deterministic "init_trainable_weights"-style init: uniform(-0.1, 0.1).
    initrange = 0.1
    w1 = jax.random.uniform(kw1, (HID_DIM, EMBEDDING_DIM),
                            minval=-initrange, maxval=initrange,
                            dtype=jnp.float32)
    b1 = jax.random.uniform(kb1, (HID_DIM,),
                            minval=-initrange, maxval=initrange,
                            dtype=jnp.float32)
    w2 = jax.random.uniform(kw2, (INPUT_DIM, HID_DIM),
                            minval=-initrange, maxval=initrange,
                            dtype=jnp.float32)
    b2 = jax.random.uniform(kb2, (INPUT_DIM,),
                            minval=-initrange, maxval=initrange,
                            dtype=jnp.float32)

    fwd = functools.partial(linear_decoder_2_forward, w1=w1, b1=b1, w2=w2, b2=b2)

    # --- 1) Tiny 3-D input: exercises squeeze(1) + the small-N XLA fast path.
    batch_small = 8
    x_small = jax.random.normal(kx, (batch_small, 1, EMBEDDING_DIM),
                                dtype=jnp.float32)
    y_small = jax.block_until_ready(fwd(x_small))
    x_sq = jnp.squeeze(x_small, axis=1)
    y_small_ref = _mlp_reference_f32(x_sq, w1, b1, w2, b2)
    assert y_small.shape == (batch_small, INPUT_DIM)
    assert jnp.allclose(y_small, y_small_ref, atol=1e-5, rtol=1e-5)

    # --- 2) Larger 2-D input: exercises the Pallas kernel (2 row tiles).
    batch_big = 1024
    x_big = jax.random.normal(kxb, (batch_big, EMBEDDING_DIM), dtype=jnp.float32)
    y_big = jax.block_until_ready(fwd(x_big))
    assert y_big.shape == (batch_big, INPUT_DIM)
    assert y_big.dtype == x_big.dtype

    # Reference with the same explicit bf16-operand / f32-accumulate recipe.
    xb = x_big.astype(jnp.bfloat16).astype(jnp.float32)
    w1b = w1.astype(jnp.bfloat16).astype(jnp.float32)
    w2b = w2.astype(jnp.bfloat16).astype(jnp.float32)
    h_ref = jnp.maximum(xb @ w1b.T + b1, 0.0)
    y_big_ref = h_ref.astype(jnp.bfloat16).astype(jnp.float32) @ w2b.T + b2
    assert jnp.allclose(y_big, y_big_ref, atol=1e-3, rtol=1e-3)

    # Sanity vs. the full-f32 reference (bf16-operand error budget).
    y_big_ref_f32 = _mlp_reference_f32(x_big, w1, b1, w2, b2)
    assert jnp.allclose(y_big, y_big_ref_f32, atol=3e-2, rtol=3e-2)

    print("KERNEL_OK")
</pallas_src>

<mosaic_0001>
module attributes {stable_mosaic.version = 11 : i64} {
  func.func @_mlp_kernel(%arg0: i32, %arg1: memref<512x32xbf16, #tpu.memory_space<vmem>>, %arg2: memref<128x32xbf16, #tpu.memory_space<vmem>>, %arg3: memref<1x128xf32, #tpu.memory_space<vmem>>, %arg4: memref<64x128xbf16, #tpu.memory_space<vmem>>, %arg5: memref<1x64xf32, #tpu.memory_space<vmem>>, %arg6: memref<512x64xf32, #tpu.memory_space<vmem>>) attributes {dimension_semantics = [#tpu.dimension_semantics<parallel>], iteration_bounds = array<i64: 2>, scalar_prefetch = 0 : i64, scratch_operands = 0 : i64, tpu.core_type = #tpu.core_type<tc>, window_params = [{transform_indices = @transform_0, window_bounds = array<i64: 512, 32>}, {pipeline_mode = #tpu.pipeline_mode<synchronous>, transform_indices = @transform_1, window_bounds = array<i64: 128, 32>}, {pipeline_mode = #tpu.pipeline_mode<synchronous>, transform_indices = @transform_2, window_bounds = array<i64: 1, 128>}, {pipeline_mode = #tpu.pipeline_mode<synchronous>, transform_indices = @transform_3, window_bounds = array<i64: 64, 128>}, {pipeline_mode = #tpu.pipeline_mode<synchronous>, transform_indices = @transform_4, window_bounds = array<i64: 1, 64>}, {transform_indices = @transform_5, window_bounds = array<i64: 512, 64>}]} {
    %c0 = arith.constant 0 : index
    %c0_0 = arith.constant 0 : index
    %0 = vector.load %arg1[%c0, %c0_0] : memref<512x32xbf16, #tpu.memory_space<vmem>>, vector<512x32xbf16>
    %c0_1 = arith.constant 0 : index
    %c0_2 = arith.constant 0 : index
    %1 = vector.load %arg2[%c0_1, %c0_2] : memref<128x32xbf16, #tpu.memory_space<vmem>>, vector<128x32xbf16>
    %cst = arith.constant dense<0.000000e+00> : vector<512x128xf32>
    %2 = tpu.matmul %0, %1, %cst {dimension_numbers = #tpu.dot_dimension_numbers<[1], [1], [0], [0], [0, 0, 1, 0], [], []>} : vector<512x32xbf16>, vector<128x32xbf16>, vector<512x128xf32> -> vector<512x128xf32>
    %c0_3 = arith.constant 0 : index
    %c0_4 = arith.constant 0 : index
    %3 = vector.load %arg3[%c0_3, %c0_4] : memref<1x128xf32, #tpu.memory_space<vmem>>, vector<1x128xf32>
    %4 = vector.broadcast %3 : vector<1x128xf32> to vector<512x128xf32>
    %5 = arith.addf %2, %4 : vector<512x128xf32>
    %cst_5 = arith.constant 0.000000e+00 : f32
    %6 = vector.broadcast %cst_5 : f32 to vector<512x128xf32>
    %7 = arith.maximumf %5, %6 : vector<512x128xf32>
    %8 = arith.truncf %7 : vector<512x128xf32> to vector<512x128xbf16>
    %c0_6 = arith.constant 0 : index
    %c0_7 = arith.constant 0 : index
    %9 = vector.load %arg4[%c0_6, %c0_7] : memref<64x128xbf16, #tpu.memory_space<vmem>>, vector<64x128xbf16>
    %cst_8 = arith.constant dense<0.000000e+00> : vector<512x64xf32>
    %10 = tpu.matmul %8, %9, %cst_8 {dimension_numbers = #tpu.dot_dimension_numbers<[1], [1], [0], [0], [0, 0, 1, 0], [], []>} : vector<512x128xbf16>, vector<64x128xbf16>, vector<512x64xf32> -> vector<512x64xf32>
    %c0_9 = arith.constant 0 : index
    %c0_10 = arith.constant 0 : index
    %11 = vector.load %arg5[%c0_9, %c0_10] : memref<1x64xf32, #tpu.memory_space<vmem>>, vector<1x64xf32>
    %12 = vector.broadcast %11 : vector<1x64xf32> to vector<512x64xf32>
    %13 = arith.addf %10, %12 : vector<512x64xf32>
    %c0_11 = arith.constant 0 : index
    %c0_12 = arith.constant 0 : index
    %14 = vector.load %arg6[%c0_11, %c0_12] : memref<512x64xf32, #tpu.memory_space<vmem>>, vector<512x64xf32>
    tpu.vector_store %arg6[%c0_11, %c0_12], %13 {strides = array<i32>} : memref<512x64xf32, #tpu.memory_space<vmem>>, vector<512x64xf32>,
    return
  }
  func.func @transform_0(%arg0: i32) -> (i32, i32) {
    %c0_i32 = arith.constant 0 : i32
    %c0_i32_0 = arith.constant 0 : i32
    return %arg0, %c0_i32 : i32, i32
  }
  func.func @transform_1(%arg0: i32) -> (i32, i32) {
    %c0_i32 = arith.constant 0 : i32
    %c0_i32_0 = arith.constant 0 : i32
    %c0_i32_1 = arith.constant 0 : i32
    return %c0_i32, %c0_i32_0 : i32, i32
  }
  func.func @transform_2(%arg0: i32) -> (i32, i32) {
    %c0_i32 = arith.constant 0 : i32
    %c0_i32_0 = arith.constant 0 : i32
    %c0_i32_1 = arith.constant 0 : i32
    return %c0_i32, %c0_i32_0 : i32, i32
  }
  func.func @transform_3(%arg0: i32) -> (i32, i32) {
    %c0_i32 = arith.constant 0 : i32
    %c0_i32_0 = arith.constant 0 : i32
    %c0_i32_1 = arith.constant 0 : i32
    return %c0_i32, %c0_i32_0 : i32, i32
  }
  func.func @transform_4(%arg0: i32) -> (i32, i32) {
    %c0_i32 = arith.constant 0 : i32
    %c0_i32_0 = arith.constant 0 : i32
    %c0_i32_1 = arith.constant 0 : i32
    return %c0_i32, %c0_i32_0 : i32, i32
  }
  func.func @transform_5(%arg0: i32) -> (i32, i32) {
    %c0_i32 = arith.constant 0 : i32
    %c0_i32_0 = arith.constant 0 : i32
    return %arg0, %c0_i32 : i32, i32
  }
}

</mosaic_0001>

<bundles_post_ra>
// kernel: tpu_custom_call.1
= control target key start
LH: loop header
LB: loop body
LE: loop exit
PB: predicated region body
PF: predicated region fallthrough
CT: control target
= control target key end

     0   :  { %s1886_s18 = smov 0   ;;  %s2293_s0 = inlined_call_operand.vmem [shape: bf16[1024,32], index: 0, kind: input, shape index: {}]   ;;  %s2294_s1 = inlined_call_operand.vmem [shape: bf16[128,32], index: 1, kind: input, shape index: {}]   ;;  %s2295_s2 = inlined_call_operand.vmem [shape: f32[1,128], index: 2, kind: input, shape index: {}]   ;;  %s2296_s3 = inlined_call_operand.vmem [shape: bf16[64,128], index: 3, kind: input, shape index: {}]   ;;  %s2297_s4 = inlined_call_operand.vmem [shape: f32[1,64], index: 4, kind: input, shape index: {}]   ;;  %s2298_s5 = inlined_call_operand.vmem [shape: f32[1024,64], index: 5, kind: output, shape index: {}]  }
   0x1 LB: > { %s1471_s19 = sadd.s32 4294967295, %s1854_s18   ;;  %p1475_p0 = scmp.ge.s32.totalorder %s1854_s18, 1  ;;  %s1854_s18 = sphi %s1886_s18, %s15_s18  }
   0x2   : > { %p188_p1 = scmp.lt.s32.totalorder %s1854_s18, 3 }
   0x4   : > { %p189_p2 = pnand %p1475_p0, %p188_p1 }
   0x5   : > { %v1804_v0 = vld [vmem:[%s2294_s1] sm:$0xff] (!%p189_p2)   ;;  %vm516_vm0 = vcmask (!%p189_p2), 261120   ;;  %v1805_v1 = vld [vmem:[%s2294_s1 + $0x8] sm:$0xff] (!%p189_p2)   ;;  %s1476_s24 = sshll.u32 (!%p189_p2), %s1471_s19, 6  ;;  %v1806_v3 = vld [vmem:[%s2294_s1 + $0x10] sm:$0xff] (!%p189_p2)   ;;  %vm1350_vm1 = vcmask (!%p189_p2), 523264  }
   0x6   : > { %192 = sbr.rel (%p189_p2) target bundleno = 630 (0x276), region = 40  ;;  %1788 = vmatprep.subr.msk.bf16.mxu0 (!%p189_p2), %vm516_vm0, %v1804_v0  ;;  %v614_v2 = vsel (!%p189_p2), %vm516_vm0, %v1804_v0, 0  ;;  %v617_v4 = vsel (!%p189_p2), %vm516_vm0, %v1805_v1, 0  ;;  %p217_p3 = scmp.lt.s32.totalorder (!%p189_p2), %s1476_s24, 127  ;;  %v620_v6 = vsel (!%p189_p2), %vm516_vm0, %v1806_v3, 0  ;;  %v1807_v7 = vld [vmem:[%s2294_s1 + $0x18] sm:$0xff] (!%p189_p2)  }
   0x7   : > { %1637 = vmatpush3.bf16.xpose.msra.mxu0 (!%p189_p2), %v614_v2  ;;  %v623_v8 = vsel (!%p189_p2), %vm516_vm0, %v1807_v7, 0  ;;  %v1808_v9 = vld [vmem:[%s2294_s1 + $0x20] sm:$0xff] (!%p189_p2)   ;;  %v1809_v11 = vld [vmem:[%s2294_s1 + $0x28] sm:$0xff] (!%p189_p2)   ;;  %v1810_v13 = vld [vmem:[%s2294_s1 + $0x30] sm:$0xff] (!%p189_p2)  }
   0x8   : > { %1789 = vmatprep.subr.msk.bf16.mxu0 (!%p189_p2), %vm516_vm0, %v1805_v1  ;;  %v626_v10 = vsel (!%p189_p2), %vm516_vm0, %v1808_v9, 0  ;;  %v629_v12 = vsel (!%p189_p2), %vm516_vm0, %v1809_v11, 0  ;;  %v632_v14 = vsel (!%p189_p2), %vm516_vm0, %v1810_v13, 0  ;;  %v1811_v15 = vld [vmem:[%s2294_s1 + $0x38] sm:$0xff] (!%p189_p2)   ;;  %v1844_v17 = vld [vmem:[%s2296_s3] sm:$0xff] (!%p189_p2)   ;;  %v1845_v18 = vld [vmem:[%s2296_s3 + $0x8] sm:$0xff] (!%p189_p2)  }
   0x9   : > { %v635_v16 = vsel (!%p189_p2), %vm516_vm0, %v1811_v15, 0  ;;  %1716 = vmatprep.subr.bf16.mxu1 (!%p189_p2), %v1844_v17  ;;  %v1846_v21 = vld [vmem:[%s2296_s3 + $0x10] sm:$0xff] (!%p189_p2)   ;;  %v1847_v43 = vld [vmem:[%s2296_s3 + $0x18] sm:$0xff] (!%p189_p2)   ;;  %v2021_v52 = vld [vmem:[%s2295_s2] ss:$0 sm:$0xff] (!%p189_p2) }
   0xa   : > { %1717 = vmatpush3.bf16.xpose.msra.mxu1 (!%p189_p2), %v1844_v17 }
   0xb   : > { %1718 = vmatprep.subr.bf16.mxu1 (!%p189_p2), %v1845_v18 }
   0xd   : > { %s2300_s24 = smov (!%p217_p3, %s1476_s24), 127 }
   0xe   : > { %s1477_s27 = sshll.u32 %s2300_s24, 2  ;;  %s1479_s28 = sshll.u32 %s2300_s24, 3 }
   0xf   : > { %1639 = vmatpush3.bf16.xpose.msra.mxu0 %v617_v4  ;;  %s1914_s30 = scalar_lea.vmem %s2293_s0, %s1477_s27  ;;  %s2096_s8 = scalar_lea.vmem %s2298_s5, %s1479_s28 }
  0x10   : > { %1790 = vmatprep.subr.msk.bf16.mxu0 %vm516_vm0, %v1806_v3  ;;  %v1812_v5 = vld [vmem:[%s1914_s30] sm:$0xff]   ;;  %v1813_v19 = vld [vmem:[%s1914_s30 + $0x8] sm:$0xff]   ;;  %v1814_v20 = vld [vmem:[%s1914_s30 + $0x10] sm:$0xff]  }
  0x11   : > { %1652 = vmatprep.mubr.msk.bf16.mxu0 %vm516_vm0, %v1812_v5  ;;  %v1815_v22 = vld [vmem:[%s1914_s30 + $0x18] sm:$0xff]   ;;  %v1816_v23 = vld [vmem:[%s1914_s30 + $0x20] sm:$0xff]   ;;  %v1817_v24 = vld [vmem:[%s1914_s30 + $0x28] sm:$0xff]  }
  0x12   : > { %1719 = vmatpush3.bf16.xpose.msra.mxu1 %v1845_v18  ;;  %v1818_v25 = vld [vmem:[%s1914_s30 + $0x30] sm:$0xff]   ;;  %v1819_v26 = vld [vmem:[%s1914_s30 + $0x38] sm:$0xff]   ;;  %v1820_v27 = vld [vmem:[%s1914_s30 + $0x40] sm:$0xff]  }
  0x13   : > { %1720 = vmatprep.subr.bf16.mxu1 %v1846_v21  ;;  %v1821_v28 = vld [vmem:[%s1914_s30 + $0x48] sm:$0xff]   ;;  %v1822_v29 = vld [vmem:[%s1914_s30 + $0x50] sm:$0xff]   ;;  %v1823_v30 = vld [vmem:[%s1914_s30 + $0x58] sm:$0xff]  }
  0x14   : > { %v1824_v31 = vld [vmem:[%s1914_s30 + $0x60] sm:$0xff]   ;;  %v1825_v32 = vld [vmem:[%s1914_s30 + $0x68] sm:$0xff]   ;;  %v1826_v33 = vld [vmem:[%s1914_s30 + $0x70] sm:$0xff]  }
  0x15   : > { %v1827_v34 = vld [vmem:[%s1914_s30 + $0x78] sm:$0xff]   ;;  %v1828_v35 = vld [vmem:[%s1914_s30 + $0x80] sm:$0xff]   ;;  %v1829_v36 = vld [vmem:[%s1914_s30 + $0x88] sm:$0xff]  }
  0x16   : > { %v1830_v37 = vld [vmem:[%s1914_s30 + $0x90] sm:$0xff]   ;;  %v1831_v38 = vld [vmem:[%s1914_s30 + $0x98] sm:$0xff]   ;;  %v1832_v39 = vld [vmem:[%s1914_s30 + $0xa0] sm:$0xff]  }
  0x17   : > { %1641 = vmatpush3.bf16.xpose.msra.mxu0 %v620_v6  ;;  %v1833_v40 = vld [vmem:[%s1914_s30 + $0xa8] sm:$0xff]   ;;  %v1834_v41 = vld [vmem:[%s1914_s30 + $0xb0] sm:$0xff]   ;;  %v1835_v42 = vld [vmem:[%s1914_s30 + $0xb8] sm:$0xff]  }
  0x18   : > { %1791 = vmatprep.subr.msk.bf16.mxu0 %vm516_vm0, %v1807_v7  ;;  %v1836_v44 = vld [vmem:[%s1914_s30 + $0xc0] sm:$0xff]   ;;  %v1837_v45 = vld [vmem:[%s1914_s30 + $0xc8] sm:$0xff]   ;;  %v1838_v46 = vld [vmem:[%s1914_s30 + $0xd0] sm:$0xff]  }
  0x19   : > { %v1839_v47 = vld [vmem:[%s1914_s30 + $0xd8] sm:$0xff]   ;;  %v1840_v48 = vld [vmem:[%s1914_s30 + $0xe0] sm:$0xff]   ;;  %v1841_v49 = vld [vmem:[%s1914_s30 + $0xe8] sm:$0xff]  }
  0x1a   : > { %1721 = vmatpush3.bf16.xpose.msra.mxu1 %v1846_v21  ;;  %v1842_v50 = vld [vmem:[%s1914_s30 + $0xf0] sm:$0xff]   ;;  %v1843_v51 = vld [vmem:[%s1914_s30 + $0xf8] sm:$0xff]  }
  0x1b   : > { %1722 = vmatprep.subr.bf16.mxu1 %v1847_v43 }
  0x1f   : > { %1643 = vmatpush3.bf16.xpose.msra.mxu0 %v623_v8 }
  0x20   : > { %1792 = vmatprep.subr.msk.bf16.mxu0 %vm516_vm0, %v1808_v9 }
  0x22   : > { %1723 = vmatpush3.bf16.xpose.msra.mxu1 %v1847_v43 }
  0x27   : > { %1645 = vmatpush3.bf16.xpose.msra.mxu0 %v626_v10 }
  0x28   : > { %1793 = vmatprep.subr.msk.bf16.mxu0 %vm516_vm0, %v1809_v11 }
  0x2f   : > { %1647 = vmatpush3.bf16.xpose.msra.mxu0 %v629_v12 }
  0x30   : > { %1794 = vmatprep.subr.msk.bf16.mxu0 %vm516_vm0, %v1810_v13 }
  0x37   : > { %1649 = vmatpush3.bf16.xpose.msra.mxu0 %v632_v14 }
  0x38   : > { %1795 = vmatprep.subr.msk.bf16.mxu0 %vm516_vm0, %v1811_v15 }
  0x3f   : > { %1651 = vmatpush3.bf16.xpose.msra.mxu0 %v635_v16 }
  0x46   : > { %1653 = vmatmul.mubr.msk.bf16.vlgmr.msra.gmra.mrb[0].mxu0 %vm516_vm0, %v1813_v19 }
  0x47   : > { %1656 = vmatprep.mubr.msk.bf16.mxu0 %vm516_vm0, %v1814_v20 }
  0x4e   : > { %1657 = vmatmul.mubr.msk.bf16.gmra.mrb[4].mxu0 %vm516_vm0, %v1815_v22 }
  0x4f   : > { %1660 = vmatprep.mubr.msk.bf16.mxu0 %vm516_vm0, %v1816_v23 }
  0x56   : > { %1661 = vmatmul.mubr.msk.bf16.gmra.mrb[8].mxu0 %vm516_vm0, %v1817_v24 }
  0x57   : > { %1664 = vmatprep.mubr.msk.bf16.mxu0 %vm516_vm0, %v1818_v25 }
  0x5e   : > { %1665 = vmatmul.mubr.msk.bf16.gmra.mrb[12].mxu0 %vm516_vm0, %v1819_v26 }
  0x5f   : > { %1668 = vmatprep.mubr.msk.bf16.mxu0 %vm516_vm0, %v1820_v27 }
  0x66   : > { %1669 = vmatmul.mubr.msk.bf16.gmra.mrb[16].mxu0 %vm516_vm0, %v1821_v28 }
  0x67   : > { %1672 = vmatprep.mubr.msk.bf16.mxu0 %vm516_vm0, %v1822_v29 }
  0x6e   : > { %1673 = vmatmul.mubr.msk.bf16.gmra.mrb[20].mxu0 %vm516_vm0, %v1823_v30 }
  0x6f   : > { %1676 = vmatprep.mubr.msk.bf16.mxu0 %vm516_vm0, %v1824_v31 }
  0x76   : > { %1677 = vmatmul.mubr.msk.bf16.gmra.mrb[24].mxu0 %vm516_vm0, %v1825_v32 }
  0x77   : > { %1680 = vmatprep.mubr.msk.bf16.mxu0 %vm516_vm0, %v1826_v33 }
  0x7e   : > { %1681 = vmatmul.mubr.msk.bf16.gmra.mrb[28].mxu0 %vm516_vm0, %v1827_v34 }
  0x7f   : > { %1684 = vmatprep.mubr.msk.bf16.mxu0 %vm516_vm0, %v1828_v35 }
  0x86   : > { %1685 = vmatmul.mubr.msk.bf16.gmra.mrb[32].mxu0 %vm516_vm0, %v1829_v36 }
  0x87   : > { %1688 = vmatprep.mubr.msk.bf16.mxu0 %vm516_vm0, %v1830_v37 }
  0x8e   : > { %1689 = vmatmul.mubr.msk.bf16.gmra.mrb[36].mxu0 %vm516_vm0, %v1831_v38 }
  0x8f   : > { %1692 = vmatprep.mubr.msk.bf16.mxu0 %vm516_vm0, %v1832_v39 }
  0x96   : > { %1693 = vmatmul.mubr.msk.bf16.gmra.mrb[40].mxu0 %vm516_vm0, %v1833_v40 }
  0x97   : > { %1696 = vmatprep.mubr.msk.bf16.mxu0 %vm516_vm0, %v1834_v41 }
  0x9e   : > { %1697 = vmatmul.mubr.msk.bf16.gmra.mrb[44].mxu0 %vm516_vm0, %v1835_v42 }
  0x9f   : > { %1700 = vmatprep.mubr.msk.bf16.mxu0 %vm516_vm0, %v1836_v44 }
  0xa6   : > { %1701 = vmatmul.mubr.msk.bf16.gmra.mrb[48].mxu0 %vm516_vm0, %v1837_v45 }
  0xa7   : > { %1704 = vmatprep.mubr.msk.bf16.mxu0 %vm516_vm0, %v1838_v46 }
  0xae   : > { %1705 = vmatmul.mubr.msk.bf16.gmra.mrb[52].mxu0 %vm516_vm0, %v1839_v47 }
  0xaf   : > { %1708 = vmatprep.mubr.msk.bf16.mxu0 %vm516_vm0, %v1840_v48 }
  0xb6   : > { %1709 = vmatmul.mubr.msk.bf16.gmra.mrb[56].mxu0 %vm516_vm0, %v1841_v49 }
  0xb7   : > { %1712 = vmatprep.mubr.msk.bf16.mxu0 %vm516_vm0, %v1842_v50 }
  0xbe   : > { %1713 = vmatmul.mubr.msk.bf16.gmra.mrb[60].mxu0 %vm516_vm0, %v1843_v51 }
 0x119   : > { %v1654_v53 = vpop.f32.mrb[0].mxu0 }
 0x11a   : > { %v680_v54 = vadd.f32 %v1654_v53, %v2021_v52  ;;  %v671_v55 = vpop.f32.mrb[1].mxu0 }
 0x11b   : > { %v672_v56 = vadd.f32 %v2021_v52, %v671_v55  ;;  %v1655_v57 = vpop.f32.mrb[2].mxu0 }
 0x11c   : > { %v683_v58 = vadd.f32 %v1655_v57, %v2021_v52  ;;  %v674_v59 = vpop.f32.mrb[3].mxu0  ;;  %v928_v61 = vmax.f32 %v680_v54, 0.0 }
 0x11d   : > { %v675_v60 = vadd.f32 %v2021_v52, %v674_v59  ;;  %v926_v63 = vmax.f32 %v672_v56, 0.0 }
 0x11e   : > { %v929_v62 = vmax.f32 %v683_v58, 0.0 }
 0x11f   : > { %v927_v0 = vmax.f32 %v675_v60, 0.0 }
 0x120   : > { %v991_v1 = vpack.c.bf16 %v929_v62, %v928_v61 }
 0x121   : > { %v1658_v2 = vpop.f32.mrb[4].mxu0  ;;  %v990_v3 = vpack.c.bf16 %v927_v0, %v926_v63 }
 0x122   : > { %v696_v4 = vadd.f32 %v1658_v2, %v2021_v52  ;;  %v687_v5 = vpop.f32.mrb[5].mxu0 }
 0x123   : > { %v688_v6 = vadd.f32 %v2021_v52, %v687_v5  ;;  %v1659_v7 = vpop.f32.mrb[6].mxu0  ;;  %1724 = vmatprep.mubr.bf16.mxu1 %v990_v3 }
 0x124   : > { %v699_v8 = vadd.f32 %v1659_v7, %v2021_v52  ;;  %v690_v9 = vpop.f32.mrb[7].mxu0  ;;  %1725 = vmatmul.mubr.bf16.vlgmr.msra.gmra.mrb[0].mxu1 %v991_v1  ;;  %v932_v11 = vmax.f32 %v696_v4, 0.0 }
 0x125   : > { %v691_v10 = vadd.f32 %v2021_v52, %v690_v9  ;;  %v930_v13 = vmax.f32 %v688_v6, 0.0 }
 0x126   : > { %v933_v12 = vmax.f32 %v699_v8, 0.0 }
 0x127   : > { %v931_v14 = vmax.f32 %v691_v10, 0.0 }
 0x128   : > { %v993_v15 = vpack.c.bf16 %v933_v12, %v932_v11 }
 0x129   : > { %v992_v16 = vpack.c.bf16 %v931_v14, %v930_v13  ;;  %v1662_v17 = vpop.f32.mrb[8].mxu0 }
 0x12a   : > { %v712_v18 = vadd.f32 %v1662_v17, %v2021_v52  ;;  %v703_v19 = vpop.f32.mrb[9].mxu0 }
 0x12b   : > { %v704_v20 = vadd.f32 %v2021_v52, %v703_v19  ;;  %v1663_v21 = vpop.f32.mrb[10].mxu0  ;;  %1728 = vmatprep.mubr.bf16.mxu1 %v992_v16 }
 0x12c   : > { %v715_v22 = vadd.f32 %v1663_v21, %v2021_v52  ;;  %v706_v23 = vpop.f32.mrb[11].mxu0  ;;  %1729 = vmatmul.mubr.bf16.gmra.mrb[4].mxu1 %v993_v15  ;;  %v936_v25 = vmax.f32 %v712_v18, 0.0 }
 0x12d   : > { %v707_v24 = vadd.f32 %v2021_v52, %v706_v23  ;;  %v934_v27 = vmax.f32 %v704_v20, 0.0 }
 0x12e   : > { %v937_v26 = vmax.f32 %v715_v22, 0.0 }
 0x12f   : > { %v935_v28 = vmax.f32 %v707_v24, 0.0 }
 0x130   : > { %v995_v29 = vpack.c.bf16 %v937_v26, %v936_v25 }
 0x131   : > { %v994_v30 = vpack.c.bf16 %v935_v28, %v934_v27  ;;  %v1666_v31 = vpop.f32.mrb[12].mxu0 }
 0x132   : > { %v728_v32 = vadd.f32 %v1666_v31, %v2021_v52  ;;  %v719_v33 = vpop.f32.mrb[13].mxu0 }
 0x133   : > { %v720_v34 = vadd.f32 %v2021_v52, %v719_v33  ;;  %v1667_v35 = vpop.f32.mrb[14].mxu0  ;;  %1732 = vmatprep.mubr.bf16.mxu1 %v994_v30 }
 0x134   : > { %v731_v36 = vadd.f32 %v1667_v35, %v2021_v52  ;;  %v722_v37 = vpop.f32.mrb[15].mxu0  ;;  %1733 = vmatmul.mubr.bf16.gmra.mrb[8].mxu1 %v995_v29  ;;  %v940_v39 = vmax.f32 %v728_v32, 0.0 }
 0x135   : > { %v723_v38 = vadd.f32 %v2021_v52, %v722_v37  ;;  %v938_v41 = vmax.f32 %v720_v34, 0.0 }
 0x136   : > { %v941_v40 = vmax.f32 %v731_v36, 0.0 }
 0x137   : > { %v939_v42 = vmax.f32 %v723_v38, 0.0 }
 0x138   : > { %v997_v43 = vpack.c.bf16 %v941_v40, %v940_v39 }
 0x139   : > { %v996_v44 = vpack.c.bf16 %v939_v42, %v938_v41  ;;  %v1670_v45 = vpop.f32.mrb[16].mxu0 }
 0x13a   : > { %v744_v46 = vadd.f32 %v1670_v45, %v2021_v52  ;;  %v735_v47 = vpop.f32.mrb[17].mxu0 }
 0x13b   : > { %v736_v48 = vadd.f32 %v2021_v52, %v735_v47  ;;  %v1671_v49 = vpop.f32.mrb[18].mxu0  ;;  %1736 = vmatprep.mubr.bf16.mxu1 %v996_v44 }
 0x13c   : > { %v747_v50 = vadd.f32 %v1671_v49, %v2021_v52  ;;  %v738_v51 = vpop.f32.mrb[19].mxu0  ;;  %1737 = vmatmul.mubr.bf16.gmra.mrb[12].mxu1 %v997_v43  ;;  %v944_v54 = vmax.f32 %v744_v46, 0.0 }
 0x13d   : > { %v739_v53 = vadd.f32 %v2021_v52, %v738_v51  ;;  %v942_v56 = vmax.f32 %v736_v48, 0.0 }
 0x13e   : > { %v945_v55 = vmax.f32 %v747_v50, 0.0 }
 0x13f   : > { %v943_v57 = vmax.f32 %v739_v53, 0.0 }
 0x140   : > { %v999_v58 = vpack.c.bf16 %v945_v55, %v944_v54 }
 0x141   : > { %v998_v59 = vpack.c.bf16 %v943_v57, %v942_v56  ;;  %v1674_v60 = vpop.f32.mrb[20].mxu0 }
 0x142   : > { %v760_v61 = vadd.f32 %v1674_v60, %v2021_v52  ;;  %v751_v62 = vpop.f32.mrb[21].mxu0 }
 0x143   : > { %v752_v63 = vadd.f32 %v2021_v52, %v751_v62  ;;  %v1675_v0 = vpop.f32.mrb[22].mxu0  ;;  %1740 = vmatprep.mubr.bf16.mxu1 %v998_v59 }
 0x144   : > { %v763_v1 = vadd.f32 %v1675_v0, %v2021_v52  ;;  %v754_v2 = vpop.f32.mrb[23].mxu0  ;;  %1741 = vmatmul.mubr.bf16.gmra.mrb[16].mxu1 %v999_v58  ;;  %v948_v4 = vmax.f32 %v760_v61, 0.0 }
 0x145   : > { %v755_v3 = vadd.f32 %v2021_v52, %v754_v2  ;;  %v946_v6 = vmax.f32 %v752_v63, 0.0 }
 0x146   : > { %v949_v5 = vmax.f32 %v763_v1, 0.0 }
 0x147   : > { %v947_v7 = vmax.f32 %v755_v3, 0.0 }
 0x148   : > { %v1001_v8 = vpack.c.bf16 %v949_v5, %v948_v4 }
 0x149   : > { %v1000_v9 = vpack.c.bf16 %v947_v7, %v946_v6  ;;  %v1678_v10 = vpop.f32.mrb[24].mxu0 }
 0x14a   : > { %v776_v11 = vadd.f32 %v1678_v10, %v2021_v52  ;;  %v767_v12 = vpop.f32.mrb[25].mxu0 }
 0x14b   : > { %v768_v13 = vadd.f32 %v2021_v52, %v767_v12  ;;  %v1679_v14 = vpop.f32.mrb[26].mxu0  ;;  %1744 = vmatprep.mubr.bf16.mxu1 %v1000_v9 }
 0x14c   : > { %v779_v15 = vadd.f32 %v1679_v14, %v2021_v52  ;;  %v770_v16 = vpop.f32.mrb[27].mxu0  ;;  %1745 = vmatmul.mubr.bf16.gmra.mrb[20].mxu1 %v1001_v8  ;;  %v952_v18 = vmax.f32 %v776_v11, 0.0 }
 0x14d   : > { %v771_v17 = vadd.f32 %v2021_v52, %v770_v16  ;;  %v950_v20 = vmax.f32 %v768_v13, 0.0 }
 0x14e   : > { %v953_v19 = vmax.f32 %v779_v15, 0.0 }
 0x14f   : > { %v951_v21 = vmax.f32 %v771_v17, 0.0 }
 0x150   : > { %v1003_v22 = vpack.c.bf16 %v953_v19, %v952_v18 }
 0x151   : > { %v1002_v23 = vpack.c.bf16 %v951_v21, %v950_v20  ;;  %v1682_v24 = vpop.f32.mrb[28].mxu0 }
 0x152   : > { %v792_v25 = vadd.f32 %v1682_v24, %v2021_v52  ;;  %v783_v26 = vpop.f32.mrb[29].mxu0 }
 0x153   : > { %v784_v27 = vadd.f32 %v2021_v52, %v783_v26  ;;  %v1683_v28 = vpop.f32.mrb[30].mxu0  ;;  %1748 = vmatprep.mubr.bf16.mxu1 %v1002_v23 }
 0x154   : > { %v795_v29 = vadd.f32 %v1683_v28, %v2021_v52  ;;  %v786_v30 = vpop.f32.mrb[31].mxu0  ;;  %1749 = vmatmul.mubr.bf16.gmra.mrb[24].mxu1 %v1003_v22  ;;  %v956_v32 = vmax.f32 %v792_v25, 0.0 }
 0x155   : > { %v787_v31 = vadd.f32 %v2021_v52, %v786_v30  ;;  %v954_v34 = vmax.f32 %v784_v27, 0.0 }
 0x156   : > { %v957_v33 = vmax.f32 %v795_v29, 0.0 }
 0x157   : > { %v955_v35 = vmax.f32 %v787_v31, 0.0 }
 0x158   : > { %v1005_v36 = vpack.c.bf16 %v957_v33, %v956_v32 }
 0x159   : > { %v1004_v37 = vpack.c.bf16 %v955_v35, %v954_v34  ;;  %v1686_v38 = vpop.f32.mrb[32].mxu0 }
 0x15a   : > { %v808_v39 = vadd.f32 %v1686_v38, %v2021_v52  ;;  %v799_v40 = vpop.f32.mrb[33].mxu0 }
 0x15b   : > { %v800_v41 = vadd.f32 %v2021_v52, %v799_v40  ;;  %v1687_v42 = vpop.f32.mrb[34].mxu0  ;;  %1752 = vmatprep.mubr.bf16.mxu1 %v1004_v37 }
 0x15c   : > { %v811_v43 = vadd.f32 %v1687_v42, %v2021_v52  ;;  %v802_v44 = vpop.f32.mrb[35].mxu0  ;;  %1753 = vmatmul.mubr.bf16.gmra.mrb[28].mxu1 %v1005_v36  ;;  %v960_v46 = vmax.f32 %v808_v39, 0.0 }
 0x15d   : > { %v803_v45 = vadd.f32 %v2021_v52, %v802_v44  ;;  %v958_v48 = vmax.f32 %v800_v41, 0.0 }
 0x15e   : > { %v961_v47 = vmax.f32 %v811_v43, 0.0 }
 0x15f   : > { %v959_v49 = vmax.f32 %v803_v45, 0.0 }
 0x160   : > { %v1007_v50 = vpack.c.bf16 %v961_v47, %v960_v46 }
 0x161   : > { %v1006_v51 = vpack.c.bf16 %v959_v49, %v958_v48  ;;  %v1690_v53 = vpop.f32.mrb[36].mxu0 }
 0x162   : > { %v824_v54 = vadd.f32 %v1690_v53, %v2021_v52  ;;  %v815_v55 = vpop.f32.mrb[37].mxu0 }
 0x163   : > { %v816_v56 = vadd.f32 %v2021_v52, %v815_v55  ;;  %v1691_v57 = vpop.f32.mrb[38].mxu0  ;;  %1756 = vmatprep.mubr.bf16.mxu1 %v1006_v51 }
 0x164   : > { %v827_v58 = vadd.f32 %v1691_v57, %v2021_v52  ;;  %v818_v59 = vpop.f32.mrb[39].mxu0  ;;  %1757 = vmatmul.mubr.bf16.gmra.mrb[32].mxu1 %v1007_v50  ;;  %v964_v61 = vmax.f32 %v824_v54, 0.0 }
 0x165   : > { %v819_v60 = vadd.f32 %v2021_v52, %v818_v59  ;;  %v962_v63 = vmax.f32 %v816_v56, 0.0 }
 0x166   : > { %v965_v62 = vmax.f32 %v827_v58, 0.0 }
 0x167   : > { %v963_v0 = vmax.f32 %v819_v60, 0.0 }
 0x168   : > { %v1009_v1 = vpack.c.bf16 %v965_v62, %v964_v61 }
 0x169   : > { %v1008_v2 = vpack.c.bf16 %v963_v0, %v962_v63  ;;  %v1694_v3 = vpop.f32.mrb[40].mxu0 }
 0x16a   : > { %v840_v4 = vadd.f32 %v1694_v3, %v2021_v52  ;;  %v831_v5 = vpop.f32.mrb[41].mxu0 }
 0x16b   : > { %v832_v6 = vadd.f32 %v2021_v52, %v831_v5  ;;  %v1695_v7 = vpop.f32.mrb[42].mxu0  ;;  %1760 = vmatprep.mubr.bf16.mxu1 %v1008_v2 }
 0x16c   : > { %v843_v8 = vadd.f32 %v1695_v7, %v2021_v52  ;;  %v834_v9 = vpop.f32.mrb[43].mxu0  ;;  %1761 = vmatmul.mubr.bf16.gmra.mrb[36].mxu1 %v1009_v1  ;;  %v968_v11 = vmax.f32 %v840_v4, 0.0 }
 0x16d   : > { %v835_v10 = vadd.f32 %v2021_v52, %v834_v9  ;;  %v966_v13 = vmax.f32 %v832_v6, 0.0 }
 0x16e   : > { %v969_v12 = vmax.f32 %v843_v8, 0.0 }
 0x16f   : > { %v967_v14 = vmax.f32 %v835_v10, 0.0 }
 0x170   : > { %v1011_v15 = vpack.c.bf16 %v969_v12, %v968_v11 }
 0x171   : > { %v1010_v16 = vpack.c.bf16 %v967_v14, %v966_v13  ;;  %v1698_v17 = vpop.f32.mrb[44].mxu0 }
 0x172   : > { %v856_v18 = vadd.f32 %v1698_v17, %v2021_v52  ;;  %v847_v19 = vpop.f32.mrb[45].mxu0 }
 0x173   : > { %v848_v20 = vadd.f32 %v2021_v52, %v847_v19  ;;  %v1699_v21 = vpop.f32.mrb[46].mxu0  ;;  %1764 = vmatprep.mubr.bf16.mxu1 %v1010_v16 }
 0x174   : > { %v859_v22 = vadd.f32 %v1699_v21, %v2021_v52  ;;  %v850_v23 = vpop.f32.mrb[47].mxu0  ;;  %1765 = vmatmul.mubr.bf16.gmra.mrb[40].mxu1 %v1011_v15  ;;  %v972_v25 = vmax.f32 %v856_v18, 0.0 }
 0x175   : > { %v851_v24 = vadd.f32 %v2021_v52, %v850_v23  ;;  %v970_v27 = vmax.f32 %v848_v20, 0.0 }
 0x176   : > { %v973_v26 = vmax.f32 %v859_v22, 0.0 }
 0x177   : > { %v971_v28 = vmax.f32 %v851_v24, 0.0  ;;  %v2091_v24 = vld [vmem:[%s2297_s4] ss:$0 sm:$0xff] }
 0x178   : > { %v1013_v29 = vpack.c.bf16 %v973_v26, %v972_v25 }
 0x179   : > { %v1012_v30 = vpack.c.bf16 %v971_v28, %v970_v27  ;;  %v1702_v31 = vpop.f32.mrb[48].mxu0 }
 0x17a   : > { %v872_v32 = vadd.f32 %v1702_v31, %v2021_v52  ;;  %v863_v33 = vpop.f32.mrb[49].mxu0 }
 0x17b   : > { %v864_v34 = vadd.f32 %v2021_v52, %v863_v33  ;;  %v1703_v35 = vpop.f32.mrb[50].mxu0  ;;  %1768 = vmatprep.mubr.bf16.mxu1 %v1012_v30 }
 0x17c   : > { %v875_v36 = vadd.f32 %v1703_v35, %v2021_v52  ;;  %v866_v37 = vpop.f32.mrb[51].mxu0  ;;  %1769 = vmatmul.mubr.bf16.gmra.mrb[44].mxu1 %v1013_v29  ;;  %v976_v39 = vmax.f32 %v872_v32, 0.0 }
 0x17d   : > { %v867_v38 = vadd.f32 %v2021_v52, %v866_v37  ;;  %v974_v41 = vmax.f32 %v864_v34, 0.0 }
 0x17e   : > { %v977_v40 = vmax.f32 %v875_v36, 0.0 }
 0x17f   : > { %v975_v42 = vmax.f32 %v867_v38, 0.0 }
 0x180   : > { %v1015_v43 = vpack.c.bf16 %v977_v40, %v976_v39 }
 0x181   : > { %v1014_v44 = vpack.c.bf16 %v975_v42, %v974_v41  ;;  %v1706_v45 = vpop.f32.mrb[52].mxu0 }
 0x182   : > { %v888_v46 = vadd.f32 %v1706_v45, %v2021_v52  ;;  %v879_v47 = vpop.f32.mrb[53].mxu0 }
 0x183   : > { %v880_v48 = vadd.f32 %v2021_v52, %v879_v47  ;;  %v1707_v49 = vpop.f32.mrb[54].mxu0  ;;  %1772 = vmatprep.mubr.bf16.mxu1 %v1014_v44 }
 0x184   : > { %v891_v50 = vadd.f32 %v1707_v49, %v2021_v52  ;;  %v882_v51 = vpop.f32.mrb[55].mxu0  ;;  %1773 = vmatmul.mubr.bf16.gmra.mrb[48].mxu1 %v1015_v43  ;;  %v980_v54 = vmax.f32 %v888_v46, 0.0 }
 0x185   : > { %v883_v53 = vadd.f32 %v2021_v52, %v882_v51  ;;  %v978_v56 = vmax.f32 %v880_v48, 0.0 }
 0x186   : > { %v981_v55 = vmax.f32 %v891_v50, 0.0 }
 0x187   : > { %v979_v57 = vmax.f32 %v883_v53, 0.0 }
 0x188   : > { %v1017_v58 = vpack.c.bf16 %v981_v55, %v980_v54 }
 0x189   : > { %v1016_v59 = vpack.c.bf16 %v979_v57, %v978_v56  ;;  %v1710_v60 = vpop.f32.mrb[56].mxu0 }
 0x18a   : > { %v904_v61 = vadd.f32 %v1710_v60, %v2021_v52  ;;  %v895_v62 = vpop.f32.mrb[57].mxu0 }
 0x18b   : > { %v896_v63 = vadd.f32 %v2021_v52, %v895_v62  ;;  %v1711_v0 = vpop.f32.mrb[58].mxu0  ;;  %1776 = vmatprep.mubr.bf16.mxu1 %v1016_v59 }
 0x18c   : > { %v907_v1 = vadd.f32 %v1711_v0, %v2021_v52  ;;  %v898_v2 = vpop.f32.mrb[59].mxu0  ;;  %1777 = vmatmul.mubr.bf16.gmra.mrb[52].mxu1 %v1017_v58  ;;  %v984_v4 = vmax.f32 %v904_v61, 0.0 }
 0x18d   : > { %v899_v3 = vadd.f32 %v2021_v52, %v898_v2  ;;  %v982_v6 = vmax.f32 %v896_v63, 0.0 }
 0x18e   : > { %v985_v5 = vmax.f32 %v907_v1, 0.0 }
 0x18f   : > { %v983_v7 = vmax.f32 %v899_v3, 0.0 }
 0x190   : > { %v1019_v8 = vpack.c.bf16 %v985_v5, %v984_v4 }
 0x191   : > { %v1018_v9 = vpack.c.bf16 %v983_v7, %v982_v6  ;;  %v1714_v10 = vpop.f32.mrb[60].mxu0 }
 0x192   : > { %v920_v11 = vadd.f32 %v1714_v10, %v2021_v52  ;;  %v911_v12 = vpop.f32.mrb[61].mxu0 }
 0x193   : > { %v912_v13 = vadd.f32 %v2021_v52, %v911_v12  ;;  %v1715_v14 = vpop.f32.mrb[62].mxu0  ;;  %1780 = vmatprep.mubr.bf16.mxu1 %v1018_v9 }
 0x194   : > { %v923_v15 = vadd.f32 %v1715_v14, %v2021_v52  ;;  %v914_v16 = vpop.f32.mrb[63].mxu0  ;;  %1781 = vmatmul.mubr.bf16.gmra.mrb[56].mxu1 %v1019_v8  ;;  %v988_v18 = vmax.f32 %v920_v11, 0.0 }
 0x195   : > { %v915_v17 = vadd.f32 %v2021_v52, %v914_v16  ;;  %v986_v20 = vmax.f32 %v912_v13, 0.0 }
 0x196   : > { %v989_v19 = vmax.f32 %v923_v15, 0.0 }
 0x197   : > { %v987_v21 = vmax.f32 %v915_v17, 0.0 }
 0x198   : > { %v1021_v22 = vpack.c.bf16 %v989_v19, %v988_v18 }
 0x199   : > { %v1020_v23 = vpack.c.bf16 %v987_v21, %v986_v20 }
 0x19b   : > { %1784 = vmatprep.mubr.bf16.mxu1 %v1020_v23 }
 0x19c   : > { %1785 = vmatmul.mubr.bf16.gmra.mrb[60].mxu1 %v1021_v22 }
 0x1f7   : > { %v1726_v52 = vpop.f32.mrb[0].mxu1 }
 0x1f8   : > { %v1104_v25 = vadd.f32 %v1726_v52, %v2091_v24  ;;  %v1095_v26 = vpop.f32.mrb[1].mxu1 }
 0x1f9   : > { %v1096_v27 = vadd.f32 %v2091_v24, %v1095_v26  ;;  %v1727_v28 = vpop.f32.mrb[2].mxu1 }
 0x1fa   : > { %1353 = vst.msk [vmem:[%s2096_s8 + $0x10] sm:$0xff] %vm1350_vm1, %v1104_v25  ;;  %v1107_v29 = vadd.f32 %v1727_v28, %v2091_v24  ;;  %v1098_v30 = vpop.f32.mrb[3].mxu1 }
 0x1fb   : > { %1351 = vst.msk [vmem:[%s2096_s8] sm:$0xff] %vm1350_vm1, %v1096_v27  ;;  %v1099_v31 = vadd.f32 %v2091_v24, %v1098_v30 }
 0x1fc   : > { %1354 = vst.msk [vmem:[%s2096_s8 + $0x18] sm:$0xff] %vm1350_vm1, %v1107_v29 }
 0x1fd   : > { %1352 = vst.msk [vmem:[%s2096_s8 + $0x8] sm:$0xff] %vm1350_vm1, %v1099_v31 }
 0x1ff   : > { %v1730_v32 = vpop.f32.mrb[4].mxu1 }
 0x200   : > { %v1120_v33 = vadd.f32 %v1730_v32, %v2091_v24  ;;  %v1111_v34 = vpop.f32.mrb[5].mxu1 }
 0x201   : > { %v1112_v35 = vadd.f32 %v2091_v24, %v1111_v34  ;;  %v1731_v36 = vpop.f32.mrb[6].mxu1 }
 0x202   : > { %1357 = vst.msk [vmem:[%s2096_s8 + $0x30] sm:$0xff] %vm1350_vm1, %v1120_v33  ;;  %v1123_v37 = vadd.f32 %v1731_v36, %v2091_v24  ;;  %v1114_v38 = vpop.f32.mrb[7].mxu1 }
 0x203   : > { %1355 = vst.msk [vmem:[%s2096_s8 + $0x20] sm:$0xff] %vm1350_vm1, %v1112_v35  ;;  %v1115_v39 = vadd.f32 %v2091_v24, %v1114_v38 }
 0x204   : > { %1358 = vst.msk [vmem:[%s2096_s8 + $0x38] sm:$0xff] %vm1350_vm1, %v1123_v37 }
 0x205   : > { %1356 = vst.msk [vmem:[%s2096_s8 + $0x28] sm:$0xff] %vm1350_vm1, %v1115_v39 }
 0x207   : > { %v1734_v40 = vpop.f32.mrb[8].mxu1 }
 0x208   : > { %v1136_v41 = vadd.f32 %v1734_v40, %v2091_v24  ;;  %v1127_v42 = vpop.f32.mrb[9].mxu1 }
 0x209   : > { %v1128_v43 = vadd.f32 %v2091_v24, %v1127_v42  ;;  %v1735_v44 = vpop.f32.mrb[10].mxu1 }
 0x20a   : > { %1361 = vst.msk [vmem:[%s2096_s8 + $0x50] sm:$0xff] %vm1350_vm1, %v1136_v41  ;;  %v1139_v45 = vadd.f32 %v1735_v44, %v2091_v24  ;;  %v1130_v46 = vpop.f32.mrb[11].mxu1 }
 0x20b   : > { %1359 = vst.msk [vmem:[%s2096_s8 + $0x40] sm:$0xff] %vm1350_vm1, %v1128_v43  ;;  %v1131_v47 = vadd.f32 %v2091_v24, %v1130_v46 }
 0x20c   : > { %1362 = vst.msk [vmem:[%s2096_s8 + $0x58] sm:$0xff] %vm1350_vm1, %v1139_v45 }
 0x20d   : > { %1360 = vst.msk [vmem:[%s2096_s8 + $0x48] sm:$0xff] %vm1350_vm1, %v1131_v47 }
 0x20f   : > { %v1738_v48 = vpop.f32.mrb[12].mxu1 }
 0x210   : > { %v1152_v49 = vadd.f32 %v1738_v48, %v2091_v24  ;;  %v1143_v50 = vpop.f32.mrb[13].mxu1 }
 0x211   : > { %v1144_v51 = vadd.f32 %v2091_v24, %v1143_v50  ;;  %v1739_v53 = vpop.f32.mrb[14].mxu1 }
 0x212   : > { %1365 = vst.msk [vmem:[%s2096_s8 + $0x70] sm:$0xff] %vm1350_vm1, %v1152_v49  ;;  %v1155_v54 = vadd.f32 %v1739_v53, %v2091_v24  ;;  %v1146_v55 = vpop.f32.mrb[15].mxu1 }
 0x213   : > { %1363 = vst.msk [vmem:[%s2096_s8 + $0x60] sm:$0xff] %vm1350_vm1, %v1144_v51  ;;  %v1147_v56 = vadd.f32 %v2091_v24, %v1146_v55 }
 0x214   : > { %1366 = vst.msk [vmem:[%s2096_s8 + $0x78] sm:$0xff] %vm1350_vm1, %v1155_v54 }
 0x215   : > { %1364 = vst.msk [vmem:[%s2096_s8 + $0x68] sm:$0xff] %vm1350_vm1, %v1147_v56 }
 0x217   : > { %v1742_v57 = vpop.f32.mrb[16].mxu1 }
 0x218   : > { %v1168_v58 = vadd.f32 %v1742_v57, %v2091_v24  ;;  %v1159_v59 = vpop.f32.mrb[17].mxu1 }
 0x219   : > { %v1160_v60 = vadd.f32 %v2091_v24, %v1159_v59  ;;  %v1743_v61 = vpop.f32.mrb[18].mxu1 }
 0x21a   : > { %1369 = vst.msk [vmem:[%s2096_s8 + $0x90] sm:$0xff] %vm1350_vm1, %v1168_v58  ;;  %v1171_v62 = vadd.f32 %v1743_v61, %v2091_v24  ;;  %v1162_v63 = vpop.f32.mrb[19].mxu1 }
 0x21b   : > { %1367 = vst.msk [vmem:[%s2096_s8 + $0x80] sm:$0xff] %vm1350_vm1, %v1160_v60  ;;  %v1163_v0 = vadd.f32 %v2091_v24, %v1162_v63 }
 0x21c   : > { %1370 = vst.msk [vmem:[%s2096_s8 + $0x98] sm:$0xff] %vm1350_vm1, %v1171_v62 }
 0x21d   : > { %1368 = vst.msk [vmem:[%s2096_s8 + $0x88] sm:$0xff] %vm1350_vm1, %v1163_v0 }
 0x21f   : > { %v1746_v1 = vpop.f32.mrb[20].mxu1 }
 0x220   : > { %v1184_v2 = vadd.f32 %v1746_v1, %v2091_v24  ;;  %v1175_v3 = vpop.f32.mrb[21].mxu1 }
 0x221   : > { %v1176_v4 = vadd.f32 %v2091_v24, %v1175_v3  ;;  %v1747_v5 = vpop.f32.mrb[22].mxu1 }
 0x222   : > { %1373 = vst.msk [vmem:[%s2096_s8 + $0xb0] sm:$0xff] %vm1350_vm1, %v1184_v2  ;;  %v1187_v6 = vadd.f32 %v1747_v5, %v2091_v24  ;;  %v1178_v7 = vpop.f32.mrb[23].mxu1 }
 0x223   : > { %1371 = vst.msk [vmem:[%s2096_s8 + $0xa0] sm:$0xff] %vm1350_vm1, %v1176_v4  ;;  %v1179_v8 = vadd.f32 %v2091_v24, %v1178_v7 }
 0x224   : > { %1374 = vst.msk [vmem:[%s2096_s8 + $0xb8] sm:$0xff] %vm1350_vm1, %v1187_v6 }
 0x225   : > { %1372 = vst.msk [vmem:[%s2096_s8 + $0xa8] sm:$0xff] %vm1350_vm1, %v1179_v8 }
 0x227   : > { %v1750_v9 = vpop.f32.mrb[24].mxu1 }
 0x228   : > { %v1200_v10 = vadd.f32 %v1750_v9, %v2091_v24  ;;  %v1191_v11 = vpop.f32.mrb[25].mxu1 }
 0x229   : > { %v1192_v12 = vadd.f32 %v2091_v24, %v1191_v11  ;;  %v1751_v13 = vpop.f32.mrb[26].mxu1 }
 0x22a   : > { %1377 = vst.msk [vmem:[%s2096_s8 + $0xd0] sm:$0xff] %vm1350_vm1, %v1200_v10  ;;  %v1203_v14 = vadd.f32 %v1751_v13, %v2091_v24  ;;  %v1194_v15 = vpop.f32.mrb[27].mxu1 }
 0x22b   : > { %1375 = vst.msk [vmem:[%s2096_s8 + $0xc0] sm:$0xff] %vm1350_vm1, %v1192_v12  ;;  %v1195_v16 = vadd.f32 %v2091_v24, %v1194_v15 }
 0x22c   : > { %1378 = vst.msk [vmem:[%s2096_s8 + $0xd8] sm:$0xff] %vm1350_vm1, %v1203_v14 }
 0x22d   : > { %1376 = vst.msk [vmem:[%s2096_s8 + $0xc8] sm:$0xff] %vm1350_vm1, %v1195_v16 }
 0x22f   : > { %v1754_v17 = vpop.f32.mrb[28].mxu1 }
 0x230   : > { %v1216_v18 = vadd.f32 %v1754_v17, %v2091_v24  ;;  %v1207_v19 = vpop.f32.mrb[29].mxu1 }
 0x231   : > { %v1208_v20 = vadd.f32 %v2091_v24, %v1207_v19  ;;  %v1755_v21 = vpop.f32.mrb[30].mxu1 }
 0x232   : > { %1381 = vst.msk [vmem:[%s2096_s8 + $0xf0] sm:$0xff] %vm1350_vm1, %v1216_v18  ;;  %v1219_v22 = vadd.f32 %v1755_v21, %v2091_v24  ;;  %v1210_v23 = vpop.f32.mrb[31].mxu1 }
 0x233   : > { %1379 = vst.msk [vmem:[%s2096_s8 + $0xe0] sm:$0xff] %vm1350_vm1, %v1208_v20  ;;  %v1211_v52 = vadd.f32 %v2091_v24, %v1210_v23 }
 0x234   : > { %1382 = vst.msk [vmem:[%s2096_s8 + $0xf8] sm:$0xff] %vm1350_vm1, %v1219_v22 }
 0x235   : > { %1380 = vst.msk [vmem:[%s2096_s8 + $0xe8] sm:$0xff] %vm1350_vm1, %v1211_v52 }
 0x237   : > { %v1758_v25 = vpop.f32.mrb[32].mxu1 }
 0x238   : > { %v1232_v26 = vadd.f32 %v1758_v25, %v2091_v24  ;;  %v1223_v27 = vpop.f32.mrb[33].mxu1 }
 0x239   : > { %v1224_v28 = vadd.f32 %v2091_v24, %v1223_v27  ;;  %v1759_v29 = vpop.f32.mrb[34].mxu1 }
 0x23a   : > { %1385 = vst.msk [vmem:[%s2096_s8 + $0x110] sm:$0xff] %vm1350_vm1, %v1232_v26  ;;  %v1235_v30 = vadd.f32 %v1759_v29, %v2091_v24  ;;  %v1226_v31 = vpop.f32.mrb[35].mxu1 }
 0x23b   : > { %1383 = vst.msk [vmem:[%s2096_s8 + $0x100] sm:$0xff] %vm1350_vm1, %v1224_v28  ;;  %v1227_v32 = vadd.f32 %v2091_v24, %v1226_v31 }
 0x23c   : > { %1386 = vst.msk [vmem:[%s2096_s8 + $0x118] sm:$0xff] %vm1350_vm1, %v1235_v30 }
 0x23d   : > { %1384 = vst.msk [vmem:[%s2096_s8 + $0x108] sm:$0xff] %vm1350_vm1, %v1227_v32 }
 0x23f   : > { %v1762_v33 = vpop.f32.mrb[36].mxu1 }
 0x240   : > { %v1248_v34 = vadd.f32 %v1762_v33, %v2091_v24  ;;  %v1239_v35 = vpop.f32.mrb[37].mxu1 }
 0x241   : > { %v1240_v36 = vadd.f32 %v2091_v24, %v1239_v35  ;;  %v1763_v37 = vpop.f32.mrb[38].mxu1 }
 0x242   : > { %1389 = vst.msk [vmem:[%s2096_s8 + $0x130] sm:$0xff] %vm1350_vm1, %v1248_v34  ;;  %v1251_v38 = vadd.f32 %v1763_v37, %v2091_v24  ;;  %v1242_v39 = vpop.f32.mrb[39].mxu1 }
 0x243   : > { %1387 = vst.msk [vmem:[%s2096_s8 + $0x120] sm:$0xff] %vm1350_vm1, %v1240_v36  ;;  %v1243_v40 = vadd.f32 %v2091_v24, %v1242_v39 }
 0x244   : > { %1390 = vst.msk [vmem:[%s2096_s8 + $0x138] sm:$0xff] %vm1350_vm1, %v1251_v38 }
 0x245   : > { %1388 = vst.msk [vmem:[%s2096_s8 + $0x128] sm:$0xff] %vm1350_vm1, %v1243_v40 }
 0x247   : > { %v1766_v41 = vpop.f32.mrb[40].mxu1 }
 0x248   : > { %v1264_v42 = vadd.f32 %v1766_v41, %v2091_v24  ;;  %v1255_v43 = vpop.f32.mrb[41].mxu1 }
 0x249   : > { %v1256_v44 = vadd.f32 %v2091_v24, %v1255_v43  ;;  %v1767_v45 = vpop.f32.mrb[42].mxu1 }
 0x24a   : > { %1393 = vst.msk [vmem:[%s2096_s8 + $0x150] sm:$0xff] %vm1350_vm1, %v1264_v42  ;;  %v1267_v46 = vadd.f32 %v1767_v45, %v2091_v24  ;;  %v1258_v47 = vpop.f32.mrb[43].mxu1 }
 0x24b   : > { %1391 = vst.msk [vmem:[%s2096_s8 + $0x140] sm:$0xff] %vm1350_vm1, %v1256_v44  ;;  %v1259_v48 = vadd.f32 %v2091_v24, %v1258_v47 }
 0x24c   : > { %1394 = vst.msk [vmem:[%s2096_s8 + $0x158] sm:$0xff] %vm1350_vm1, %v1267_v46 }
 0x24d   : > { %1392 = vst.msk [vmem:[%s2096_s8 + $0x148] sm:$0xff] %vm1350_vm1, %v1259_v48 }
 0x24f   : > { %v1770_v49 = vpop.f32.mrb[44].mxu1 }
 0x250   : > { %v1280_v50 = vadd.f32 %v1770_v49, %v2091_v24  ;;  %v1271_v51 = vpop.f32.mrb[45].mxu1 }
 0x251   : > { %v1272_v53 = vadd.f32 %v2091_v24, %v1271_v51  ;;  %v1771_v54 = vpop.f32.mrb[46].mxu1 }
 0x252   : > { %1397 = vst.msk [vmem:[%s2096_s8 + $0x170] sm:$0xff] %vm1350_vm1, %v1280_v50  ;;  %v1283_v55 = vadd.f32 %v1771_v54, %v2091_v24  ;;  %v1274_v56 = vpop.f32.mrb[47].mxu1 }
 0x253   : > { %1395 = vst.msk [vmem:[%s2096_s8 + $0x160] sm:$0xff] %vm1350_vm1, %v1272_v53  ;;  %v1275_v57 = vadd.f32 %v2091_v24, %v1274_v56 }
 0x254   : > { %1398 = vst.msk [vmem:[%s2096_s8 + $0x178] sm:$0xff] %vm1350_vm1, %v1283_v55 }
 0x255   : > { %1396 = vst.msk [vmem:[%s2096_s8 + $0x168] sm:$0xff] %vm1350_vm1, %v1275_v57 }
 0x257   : > { %v1774_v58 = vpop.f32.mrb[48].mxu1 }
 0x258   : > { %v1296_v59 = vadd.f32 %v1774_v58, %v2091_v24  ;;  %v1287_v60 = vpop.f32.mrb[49].mxu1 }
 0x259   : > { %v1288_v61 = vadd.f32 %v2091_v24, %v1287_v60  ;;  %v1775_v62 = vpop.f32.mrb[50].mxu1 }
 0x25a   : > { %1401 = vst.msk [vmem:[%s2096_s8 + $0x190] sm:$0xff] %vm1350_vm1, %v1296_v59  ;;  %v1299_v63 = vadd.f32 %v1775_v62, %v2091_v24  ;;  %v1290_v0 = vpop.f32.mrb[51].mxu1 }
 0x25b   : > { %1399 = vst.msk [vmem:[%s2096_s8 + $0x180] sm:$0xff] %vm1350_vm1, %v1288_v61  ;;  %v1291_v1 = vadd.f32 %v2091_v24, %v1290_v0 }
 0x25c   : > { %1402 = vst.msk [vmem:[%s2096_s8 + $0x198] sm:$0xff] %vm1350_vm1, %v1299_v63 }
 0x25d   : > { %1400 = vst.msk [vmem:[%s2096_s8 + $0x188] sm:$0xff] %vm1350_vm1, %v1291_v1 }
 0x25f   : > { %v1778_v2 = vpop.f32.mrb[52].mxu1 }
 0x260   : > { %v1312_v3 = vadd.f32 %v1778_v2, %v2091_v24  ;;  %v1303_v4 = vpop.f32.mrb[53].mxu1 }
 0x261   : > { %v1304_v5 = vadd.f32 %v2091_v24, %v1303_v4  ;;  %v1779_v6 = vpop.f32.mrb[54].mxu1 }
 0x262   : > { %1405 = vst.msk [vmem:[%s2096_s8 + $0x1b0] sm:$0xff] %vm1350_vm1, %v1312_v3  ;;  %v1315_v7 = vadd.f32 %v1779_v6, %v2091_v24  ;;  %v1306_v8 = vpop.f32.mrb[55].mxu1 }
 0x263   : > { %1403 = vst.msk [vmem:[%s2096_s8 + $0x1a0] sm:$0xff] %vm1350_vm1, %v1304_v5  ;;  %v1307_v9 = vadd.f32 %v2091_v24, %v1306_v8 }
 0x264   : > { %1406 = vst.msk [vmem:[%s2096_s8 + $0x1b8] sm:$0xff] %vm1350_vm1, %v1315_v7 }
 0x265   : > { %1404 = vst.msk [vmem:[%s2096_s8 + $0x1a8] sm:$0xff] %vm1350_vm1, %v1307_v9 }
 0x267   : > { %v1782_v10 = vpop.f32.mrb[56].mxu1 }
 0x268   : > { %v1328_v11 = vadd.f32 %v1782_v10, %v2091_v24  ;;  %v1319_v12 = vpop.f32.mrb[57].mxu1 }
 0x269   : > { %v1320_v13 = vadd.f32 %v2091_v24, %v1319_v12  ;;  %v1783_v14 = vpop.f32.mrb[58].mxu1 }
 0x26a   : > { %1409 = vst.msk [vmem:[%s2096_s8 + $0x1d0] sm:$0xff] %vm1350_vm1, %v1328_v11  ;;  %v1331_v15 = vadd.f32 %v1783_v14, %v2091_v24  ;;  %v1322_v16 = vpop.f32.mrb[59].mxu1 }
 0x26b   : > { %1407 = vst.msk [vmem:[%s2096_s8 + $0x1c0] sm:$0xff] %vm1350_vm1, %v1320_v13  ;;  %v1323_v17 = vadd.f32 %v2091_v24, %v1322_v16 }
 0x26c   : > { %1410 = vst.msk [vmem:[%s2096_s8 + $0x1d8] sm:$0xff] %vm1350_vm1, %v1331_v15 }
 0x26d   : > { %1408 = vst.msk [vmem:[%s2096_s8 + $0x1c8] sm:$0xff] %vm1350_vm1, %v1323_v17 }
 0x26f   : > { %v1786_v18 = vpop.f32.mrb[60].mxu1 }
 0x270   : > { %v1344_v19 = vadd.f32 %v1786_v18, %v2091_v24  ;;  %v1335_v20 = vpop.f32.mrb[61].mxu1 }
 0x271   : > { %v1336_v21 = vadd.f32 %v2091_v24, %v1335_v20  ;;  %v1787_v22 = vpop.f32.mrb[62].mxu1 }
 0x272   : > { %1413 = vst.msk [vmem:[%s2096_s8 + $0x1f0] sm:$0xff] %vm1350_vm1, %v1344_v19  ;;  %v1347_v23 = vadd.f32 %v1787_v22, %v2091_v24  ;;  %v1338_v52 = vpop.f32.mrb[63].mxu1 }
 0x273   : > { %1411 = vst.msk [vmem:[%s2096_s8 + $0x1e0] sm:$0xff] %vm1350_vm1, %v1336_v21  ;;  %v1339_v25 = vadd.f32 %v2091_v24, %v1338_v52 }
 0x274   : > { %1414 = vst.msk [vmem:[%s2096_s8 + $0x1f8] sm:$0xff] %vm1350_vm1, %v1347_v23 }
 0x275   : > { %1412 = vst.msk [vmem:[%s2096_s8 + $0x1e8] sm:$0xff] %vm1350_vm1, %v1339_v25 }
 0x276 PF: > { %s15_s18 = sadd.s32 1, %s1854_s18  }
 0x277   : > { %p12_p4 = scmp.ge.s32.totalorder %s15_s18, 4  }
 0x279   :  { %14 = sbr.rel (!%p12_p4) target bundleno = 1 (0x1), region = 70 }

</bundles_post_ra>
